<compile_context>
chip_gen: v7x
topology: tpu7x:2x2x1
jax: 0.10.0
libtpu: 0.0.40
codegen_flags: <defaults>
</compile_context>

<pallas_src>
import jax
import jax.numpy as jnp
from jax import lax
from jax.experimental import pallas as pl
from jax.experimental.pallas import tpu as pltpu


_VMEM_LIMIT = 64 * 1024 * 1024   # sized for v7x's 64 MiB VMEM; plenty on v5e/v6e


def _pick_tile(length, target):
    """Largest tile <= target that divides `length` with a TPU-friendly
    (multiple of 8) sublane count; falls back to the full length."""
    if length <= target:
        return length
    for t in range(target, 7, -1):
        if length % t == 0 and t % 8 == 0:
            return t
    return length


# --------------------------- KV projection kernel ---------------------------

def _kv_split_kernel(x_ref, w_ref, b_ref, k_ref, v_ref):
    # (TM, C) @ (C, 2C) + b ; split columns [0:C) -> k, [C:2C) -> v so the
    # attention kernel indexes k/v directly (no kv slices materialized in HBM).
    acc = jnp.dot(x_ref[...], w_ref[...], preferred_element_type=jnp.float32)
    acc = acc + b_ref[...]
    c = k_ref.shape[-1]
    k_ref[...] = acc[:, :c].astype(k_ref.dtype)
    v_ref[...] = acc[:, c:].astype(v_ref.dtype)


def kv_linear_split(cond_flat, wkv, bkv, *, row_tile=256):
    """cond_flat: (L, C), wkv: (C, 2C), bkv: (2C,) -> k, v each (L, C)."""
    L, C = cond_flat.shape
    C2 = wkv.shape[1]
    TM = _pick_tile(L, row_tile)
    return pl.pallas_call(
        _kv_split_kernel,
        out_shape=(jax.ShapeDtypeStruct((L, C), cond_flat.dtype),
                   jax.ShapeDtypeStruct((L, C), cond_flat.dtype)),
        grid=(L // TM,),
        in_specs=[
            pl.BlockSpec((TM, C), lambda i: (i, 0)),
            pl.BlockSpec((C, C2), lambda i: (0, 0)),
            pl.BlockSpec((1, C2), lambda i: (0, 0)),
        ],
        out_specs=(
            pl.BlockSpec((TM, C), lambda i: (i, 0)),
            pl.BlockSpec((TM, C), lambda i: (i, 0)),
        ),
        compiler_params=pltpu.CompilerParams(
            dimension_semantics=("parallel",),
            vmem_limit_bytes=_VMEM_LIMIT),
    )(cond_flat, wkv, bkv.reshape(1, C2))


# -------------------- fused q-proj + attention + out-proj -------------------

def _make_attn_kernel(scale):
    def kernel(x_ref, wq_ref, bq_ref, k_ref, v_ref, wp_ref, bp_ref,
               out_ref, q_sc, m_sc, l_sc, acc_sc):
        ki = pl.program_id(1)
        nk = pl.num_programs(1)
        H, TQ, Dh = q_sc.shape
        C = H * Dh

        @pl.when(ki == 0)
        def _init():
            # Fused q projection: the x tile is resident across the key axis,
            # so this runs once per q tile.  Pre-scale q here so the
            # O(TQ*TK) score matrix never needs an extra VPU multiply.
            q = jnp.dot(x_ref[...], wq_ref[...],
                        preferred_element_type=jnp.float32)
            q = (q + bq_ref[...]) * scale                       # (TQ, C) f32
            for h in range(H):
                q_sc[h] = q[:, h * Dh:(h + 1) * Dh]
            m_sc[...] = jnp.full_like(m_sc, -jnp.inf)
            l_sc[...] = jnp.zeros_like(l_sc)
            acc_sc[...] = jnp.zeros_like(acc_sc)

        k_tile = k_ref[...]                                     # (TK, C)
        v_tile = v_ref[...]
        # All heads handled inside one grid step (amortizes grid overhead,
        # keeps the HBM-facing blocks lane-dense (·, C)).
        for h in range(H):
            k_h = k_tile[:, h * Dh:(h + 1) * Dh]                # (TK, Dh)
            v_h = v_tile[:, h * Dh:(h + 1) * Dh]                # (TK, Dh)
            q_h = q_sc[h].astype(k_h.dtype)                     # (TQ, Dh), pre-scaled
            # Contract last dims directly: no materialized k transpose.
            s = lax.dot_general(q_h, k_h, (((1,), (1,)), ((), ())),
                                preferred_element_type=jnp.float32)  # (TQ, TK)
            m_prev = m_sc[h]                                    # (TQ, 1)
            m_new = jnp.maximum(m_prev, jnp.max(s, axis=-1, keepdims=True))
            alpha = jnp.exp(m_prev - m_new)
            p = jnp.exp(s - m_new)
            l_sc[h] = alpha * l_sc[h] + jnp.sum(p, axis=-1, keepdims=True)
            acc_sc[h] = alpha * acc_sc[h] + jnp.dot(
                p.astype(v_h.dtype), v_h, preferred_element_type=jnp.float32)
            m_sc[h] = m_new

        @pl.when(ki == nk - 1)
        def _finalize():
            # Normalize (approx reciprocal -> EUP slot) and fuse the output
            # projection; the store is a lane-dense (TQ, C) block.
            proj = jnp.zeros((TQ, C), jnp.float32)
            for h in range(H):
                o_h = acc_sc[h] * pl.reciprocal(l_sc[h], approx=True)  # (TQ, Dh)
                proj = proj + jnp.dot(o_h.astype(wp_ref.dtype),
                                      wp_ref[h * Dh:(h + 1) * Dh, :],
                                      preferred_element_type=jnp.float32)
            out_ref[...] = (proj + bp_ref[...]).astype(out_ref.dtype)

    return kernel


def fused_attention(x_flat, wq, bq, k, v, wproj, bproj, num_heads, scale,
                    *, q_tile=256, k_tile=512):
    """x_flat: (Lq, C); k, v: (Lk, C) -> (Lq, C) (q-proj, attention, out-proj)."""
    Lq, C = x_flat.shape
    Lk = k.shape[0]
    Dh = C // num_heads
    TQ = _pick_tile(Lq, q_tile)
    TK = _pick_tile(Lk, k_tile)
    kernel = _make_attn_kernel(scale)
    return pl.pallas_call(
        kernel,
        out_shape=jax.ShapeDtypeStruct((Lq, C), x_flat.dtype),
        grid=(Lq // TQ, Lk // TK),
        in_specs=[
            pl.BlockSpec((TQ, C), lambda qi, ki: (qi, 0)),   # x tile (resident over k)
            pl.BlockSpec((C, C), lambda qi, ki: (0, 0)),     # wq
            pl.BlockSpec((1, C), lambda qi, ki: (0, 0)),     # bq
            pl.BlockSpec((TK, C), lambda qi, ki: (ki, 0)),   # k tile
            pl.BlockSpec((TK, C), lambda qi, ki: (ki, 0)),   # v tile
            pl.BlockSpec((C, C), lambda qi, ki: (0, 0)),     # wproj
            pl.BlockSpec((1, C), lambda qi, ki: (0, 0)),     # bproj
        ],
        out_specs=pl.BlockSpec((TQ, C), lambda qi, ki: (qi, 0)),
        scratch_shapes=[
            pltpu.VMEM((num_heads, TQ, Dh), jnp.float32),    # scaled q
            pltpu.VMEM((num_heads, TQ, 1), jnp.float32),     # running max
            pltpu.VMEM((num_heads, TQ, 1), jnp.float32),     # running sum
            pltpu.VMEM((num_heads, TQ, Dh), jnp.float32),    # output accumulator
        ],
        compiler_params=pltpu.CompilerParams(
            dimension_semantics=("parallel", "arbitrary"),
            vmem_limit_bytes=_VMEM_LIMIT),
    )(x_flat, wq, bq.reshape(1, C), k, v, wproj, bproj.reshape(1, C))


# ------------------------------ module wrapper ------------------------------

def init_params(key, d_model):
    """Deterministic params mimicking torch.nn.Linear default init.
    Weights stored as (Cin, Cout) (transpose of the PyTorch layout)."""
    ks = jax.random.split(key, 6)
    def lin(kw, kb, cin, cout):
        bound = 1.0 / jnp.sqrt(cin)
        w = jax.random.uniform(kw, (cin, cout), jnp.float32, -bound, bound)
        b = jax.random.uniform(kb, (cout,), jnp.float32, -bound, bound)
        return w, b
    wq, bq = lin(ks[0], ks[1], d_model, d_model)
    wkv, bkv = lin(ks[2], ks[3], d_model, 2 * d_model)
    wp, bp = lin(ks[4], ks[5], d_model, d_model)
    return dict(wq=wq, bq=bq, wkv=wkv, bkv=bkv, wproj=wp, bproj=bp)


def multi_head_cross_attention(x, cond, params, num_heads, *,
                               q_tile=256, k_tile=512, kv_row_tile=256,
                               compute_dtype=None):
    """x: (B, N, C), cond: (B, M, C) -> (B, N, C).  mask=None semantics
    (queries attend over the flattened B*M key axis, as in the PyTorch code).

    compute_dtype: pass jnp.bfloat16 on v5e/v6e/v7x for MXU peak and halved
    DMA bytes (accumulation stays f32); default keeps the input dtype.
    """
    B, N, C = x.shape
    Bc, M, _ = cond.shape
    Dh = C // num_heads
    scale = 1.0 / float(Dh) ** 0.5
    out_dtype = x.dtype
    cd = compute_dtype if compute_dtype is not None else x.dtype

    xf = x.reshape(B * N, C).astype(cd)
    cf = cond.reshape(Bc * M, C).astype(cd)
    wq, bq = params["wq"].astype(cd), params["bq"].astype(cd)
    wkv, bkv = params["wkv"].astype(cd), params["bkv"].astype(cd)
    wp, bp = params["wproj"].astype(cd), params["bproj"].astype(cd)

    k, v = kv_linear_split(cf, wkv, bkv, row_tile=kv_row_tile)
    out = fused_attention(xf, wq, bq, k, v, wp, bp, num_heads, scale,
                          q_tile=q_tile, k_tile=k_tile)
    return out.reshape(B, N, C).astype(out_dtype)


def reference_forward(x, cond, params, num_heads):
    """Pure-JAX reference of the same semantics (for sanity check)."""
    B, N, C = x.shape
    Bc, M, _ = cond.shape
    Dh = C // num_heads
    q = x.reshape(B * N, C) @ params["wq"] + params["bq"]
    kv = cond.reshape(Bc * M, C) @ params["wkv"] + params["bkv"]
    k, v = kv[:, :C], kv[:, C:]
    qh = q.reshape(B * N, num_heads, Dh).transpose(1, 0, 2)
    kh = k.reshape(Bc * M, num_heads, Dh).transpose(1, 0, 2)
    vh = v.reshape(Bc * M, num_heads, Dh).transpose(1, 0, 2)
    s = jnp.einsum("hqd,hkd->hqk", qh, kh) / jnp.sqrt(jnp.float32(Dh))
    p = jax.nn.softmax(s, axis=-1)
    oh = jnp.einsum("hqk,hkd->hqd", p, vh)
    o = oh.transpose(1, 0, 2).reshape(B * N, C)
    out = o @ params["wproj"] + params["bproj"]
    return out.reshape(B, N, C)


if __name__ == "__main__":
    B, N, M = 2, 8, 8
    d_model, num_heads = 32, 4

    key = jax.random.PRNGKey(0)
    kx, kc, kp = jax.random.split(key, 3)
    x = jax.random.normal(kx, (B, N, d_model), jnp.float32)
    cond = jax.random.normal(kc, (B, M, d_model), jnp.float32)
    params = init_params(kp, d_model)

    out = multi_head_cross_attention(x, cond, params, num_heads)
    out = jax.block_until_ready(out)

    ref = reference_forward(x, cond, params, num_heads)
    assert out.shape == (B, N, d_model)
    # Tolerance loosened slightly for pl.reciprocal(approx=True) normalization.
    assert jnp.allclose(out, ref, atol=2e-2, rtol=2e-2), "mismatch vs reference"

    print("KERNEL_OK")
</pallas_src>

<mosaic_0001>
module attributes {stable_mosaic.version = 11 : i64} {
  func.func @_kv_split_kernel(%arg0: i32, %arg1: memref<16x32xf32, #tpu.memory_space<vmem>>, %arg2: memref<32x64xf32, #tpu.memory_space<vmem>>, %arg3: memref<1x64xf32, #tpu.memory_space<vmem>>, %arg4: memref<16x32xf32, #tpu.memory_space<vmem>>, %arg5: memref<16x32xf32, #tpu.memory_space<vmem>>) attributes {dimension_semantics = [#tpu.dimension_semantics<parallel>], iteration_bounds = array<i64: 1>, scalar_prefetch = 0 : i64, scratch_operands = 0 : i64, tpu.core_type = #tpu.core_type<tc>, window_params = [{transform_indices = @transform_0, window_bounds = array<i64: 16, 32>}, {pipeline_mode = #tpu.pipeline_mode<synchronous>, transform_indices = @transform_1, window_bounds = array<i64: 32, 64>}, {pipeline_mode = #tpu.pipeline_mode<synchronous>, transform_indices = @transform_2, window_bounds = array<i64: 1, 64>}, {transform_indices = @transform_3, window_bounds = array<i64: 16, 32>}, {transform_indices = @transform_4, window_bounds = array<i64: 16, 32>}]} {
    %c0 = arith.constant 0 : index
    %c0_0 = arith.constant 0 : index
    %0 = vector.load %arg1[%c0, %c0_0] : memref<16x32xf32, #tpu.memory_space<vmem>>, vector<16x32xf32>
    %c0_1 = arith.constant 0 : index
    %c0_2 = arith.constant 0 : index
    %1 = vector.load %arg2[%c0_1, %c0_2] : memref<32x64xf32, #tpu.memory_space<vmem>>, vector<32x64xf32>
    %cst = arith.constant dense<0.000000e+00> : vector<16x64xf32>
    %2 = tpu.matmul %0, %1, %cst {dimension_numbers = #tpu.dot_dimension_numbers<[1], [0], [0], [1], [0, 0, 1, 1], [], []>} : vector<16x32xf32>, vector<32x64xf32>, vector<16x64xf32> -> vector<16x64xf32>
    %c0_3 = arith.constant 0 : index
    %c0_4 = arith.constant 0 : index
    %3 = vector.load %arg3[%c0_3, %c0_4] : memref<1x64xf32, #tpu.memory_space<vmem>>, vector<1x64xf32>
    %4 = vector.broadcast %3 : vector<1x64xf32> to vector<16x64xf32>
    %5 = arith.addf %2, %4 : vector<16x64xf32>
    %6 = vector.extract_strided_slice %5 {offsets = [0, 0], sizes = [16, 32], strides = [1, 1]} : vector<16x64xf32> to vector<16x32xf32>
    %c0_5 = arith.constant 0 : index
    %c0_6 = arith.constant 0 : index
    %7 = vector.load %arg4[%c0_5, %c0_6] : memref<16x32xf32, #tpu.memory_space<vmem>>, vector<16x32xf32>
    tpu.vector_store %arg4[%c0_5, %c0_6], %6 {strides = array<i32>} : memref<16x32xf32, #tpu.memory_space<vmem>>, vector<16x32xf32>,
    %8 = vector.extract_strided_slice %5 {offsets = [0, 32], sizes = [16, 32], strides = [1, 1]} : vector<16x64xf32> to vector<16x32xf32>
    %c0_7 = arith.constant 0 : index
    %c0_8 = arith.constant 0 : index
    %9 = vector.load %arg5[%c0_7, %c0_8] : memref<16x32xf32, #tpu.memory_space<vmem>>, vector<16x32xf32>
    tpu.vector_store %arg5[%c0_7, %c0_8], %8 {strides = array<i32>} : memref<16x32xf32, #tpu.memory_space<vmem>>, vector<16x32xf32>,
    return
  }
  func.func @transform_0(%arg0: i32) -> (i32, i32) {
    %c0_i32 = arith.constant 0 : i32
    %c0_i32_0 = arith.constant 0 : i32
    return %arg0, %c0_i32 : i32, i32
  }
  func.func @transform_1(%arg0: i32) -> (i32, i32) {
    %c0_i32 = arith.constant 0 : i32
    %c0_i32_0 = arith.constant 0 : i32
    %c0_i32_1 = arith.constant 0 : i32
    return %c0_i32, %c0_i32_0 : i32, i32
  }
  func.func @transform_2(%arg0: i32) -> (i32, i32) {
    %c0_i32 = arith.constant 0 : i32
    %c0_i32_0 = arith.constant 0 : i32
    %c0_i32_1 = arith.constant 0 : i32
    return %c0_i32, %c0_i32_0 : i32, i32
  }
  func.func @transform_3(%arg0: i32) -> (i32, i32) {
    %c0_i32 = arith.constant 0 : i32
    %c0_i32_0 = arith.constant 0 : i32
    return %arg0, %c0_i32 : i32, i32
  }
  func.func @transform_4(%arg0: i32) -> (i32, i32) {
    %c0_i32 = arith.constant 0 : i32
    %c0_i32_0 = arith.constant 0 : i32
    return %arg0, %c0_i32 : i32, i32
  }
}

</mosaic_0001>

<bundles_post_ra>
// kernel: tpu_custom_call.1
= control target key start
LH: loop header
LB: loop body
LE: loop exit
PB: predicated region body
PF: predicated region fallthrough
CT: control target
= control target key end

     0   :  { %10 = vsyncpa [#allocation3], 0  ;;  %s470_s0 = inlined_call_operand.hbm [shape: f32[16,32], index: 0, kind: input, shape index: {}]   ;;  %s471_s1 = inlined_call_operand.hbm [shape: f32[32,64], index: 1, kind: input, shape index: {}]   ;;  %s472_s2 = inlined_call_operand.hbm [shape: f32[1,64], index: 2, kind: input, shape index: {}]   ;;  %s473_s3 = inlined_call_operand.hbm [shape: f32[16,32], index: 3, kind: output, shape index: {0}]   ;;  %s474_s4 = inlined_call_operand.hbm [shape: f32[16,32], index: 4, kind: output, shape index: {1}]  }
   0x1   :  { %11 = vsyncpa [#allocation6], 0 }
   0x2   :  { %12 = vsyncpa [#allocation4], 0 }
   0x3   :  { %13 = vsyncpa [#allocation10], 0  ;;  %s352_s15 = smov [#allocation5]   ;;  %s353_s17 = smov [#allocation2]  }
   0x4   :  { %s31_s16 = sshll.u32 %s352_s15, 4  ;;  %s19_s18 = sshll.u32 %s353_s17, 4  ;;  %s32_s16 = int_to_ptr.vmem [resolvable:$true] %s31_s16  ;;  %s385_s18 = int_to_ptr.vmem [resolvable:$true] %s19_s18 }
   0x5   :  { %s234_s21 = scalar_lea.hbm %s471_s1, 512 }
   0x6   :  { %p235_p0 = scmp.ne.s32.totalorder %s471_s1, %s234_s21  ;;  %p238_p1 = scmp.lt.u32.totalorder %s234_s21, %s471_s1 }
   0x8   :  { %p240_p2 = pnand %p238_p1, %p235_p0 }
   0xa   :  { %243 = shalt.err (!%p240_p2)
}
   0xb   :  { %s244_s26 = scalar_lea.vmem %s32_s16, 512  ;;  %p249_p4 = scmp.lt.s32.totalorder %s32_s16, %s32_s16 }
   0xc   :  { %p245_p3 = scmp.ne.s32.totalorder %s32_s16, %s244_s26  ;;  %p250_p5 = scmp.lt.s32.totalorder %s244_s26, %s244_s26 }
   0xe   :  { %p251_p6 = por %p250_p5, %p249_p4 }
  0x10   :  { %p252_p7 = pnand %p251_p6, %p245_p3 }
  0x12   :  { %255 = shalt.err (!%p252_p7)
}
  0x13   :  { %s354_s27 = smov 128   ;;  %s355_s28 = smov 8  }
  0x14   :  { %37 = dma.hbm_to_vmem [thread:$0]  %s471_s1, 512, %s32_s16, [#allocation6], %s354_s27, %s354_s27, %s355_s28  }
  0x15   :  { %s256_s7 = scalar_lea.hbm %s470_s0, 256 }
  0x16   :  { %p257_p8 = scmp.ne.s32.totalorder %s470_s0, %s256_s7  ;;  %p260_p9 = scmp.lt.u32.totalorder %s256_s7, %s470_s0 }
  0x18   :  { %p262_p10 = pnand %p260_p9, %p257_p8 }
  0x1a   :  { %265 = shalt.err (!%p262_p10)
}
  0x1b   :  { %s266_s12 = scalar_lea.vmem %s385_s18, 256  ;;  %p271_p12 = scmp.lt.s32.totalorder %s385_s18, %s385_s18 }
  0x1c   :  { %p267_p11 = scmp.ne.s32.totalorder %s385_s18, %s266_s12  ;;  %p272_p13 = scmp.lt.s32.totalorder %s266_s12, %s266_s12 }
  0x1e   :  { %p273_p0 = por %p272_p13, %p271_p12 }
  0x20   :  { %p274_p1 = pnand %p273_p0, %p267_p11 }
  0x22   :  { %277 = shalt.err (!%p274_p1)
}
  0x23   :  { %25 = dma.hbm_to_vmem [thread:$0]  %s470_s0, 256, %s385_s18, [#allocation3], %s354_s27, %s354_s27, %s355_s28  }
  0x24   :  { %s356_s14 = smov [#allocation7]   ;;  %s278_s19 = scalar_lea.hbm %s472_s2, 16 }
  0x25   :  { %s44_s15 = sshll.u32 %s356_s14, 4  ;;  %p279_p2 = scmp.ne.s32.totalorder %s472_s2, %s278_s19  ;;  %s45_s15 = int_to_ptr.vmem [resolvable:$true] %s44_s15 }
  0x26   :  { %p282_p3 = scmp.lt.u32.totalorder %s278_s19, %s472_s2 }
  0x28   :  { %p284_p4 = pnand %p282_p3, %p279_p2 }
  0x2a   :  { %287 = shalt.err (!%p284_p4)
}
  0x2b   :  { %s288_s24 = scalar_lea.vmem %s45_s15, 16  ;;  %s292_s0 = scalar_lea.vmem %s45_s15, 32 }
  0x2c   :  { %p289_p5 = scmp.ne.s32.totalorder %s45_s15, %s288_s24  ;;  %p293_p6 = scmp.lt.s32.totalorder %s45_s15, %s45_s15 }
  0x2d   :  { %p294_p7 = scmp.lt.s32.totalorder %s292_s0, %s288_s24 }
  0x2f   :  { %p295_p8 = por %p294_p7, %p293_p6 }
  0x31   :  { %p296_p9 = pnand %p295_p8, %p289_p5 }
  0x33   :  { %299 = shalt.err (!%p296_p9)
}
  0x34   :  { %47 = dma.hbm_to_vmem [thread:$0]  %s472_s2, 16, %s45_s15, [#allocation6]  }
  0x35   :  { %344 = dma.done.wait [#allocation3], 256  }
  0x36   :  { %345 = vsyncadd [#allocation3], 4294967040 }
  0x37   :  { %346 = dma.done.wait [#allocation6], 528  }
  0x38   :  { %347 = vsyncadd [#allocation6], 4294966768  ;;  %vm70_vm0 = vcmask 261120   ;;  %v59_v0 = vld [vmem:[#allocation5] sm:$0xff]  ;;  %v60_v1 = vld [vmem:[#allocation5 + $0x8] sm:$0xff]  ;;  %s357_s2 = smov [#allocation8]  }
  0x39   :  { %v61_v2 = vld [vmem:[#allocation5 + $0x10] sm:$0xff]  ;;  %v218_v3 = vpack.c.bf16 %v60_v1, %v59_v0  ;;  %v62_v4 = vld [vmem:[#allocation5 + $0x18] sm:$0xff]  ;;  %v198_v8 = vld [vmem:[#allocation7] ss:$0 sm:$0xff]  ;;  %s169_s26 = sshll.u32 %s357_s2, 4  ;;  %s358_s29 = smov 96   ;;  %s170_s26 = int_to_ptr.vmem [resolvable:$true] %s169_s26 }
  0x3a   :  { %v57_v5 = vld [vmem:[#allocation2] sm:$0xff]  ;;  %v222_v6 = vpack.c.bf16 %v62_v4, %v61_v2  ;;  %v58_v7 = vld [vmem:[#allocation2 + $0x8] sm:$0xff]  ;;  %s300_s30 = scalar_lea.vmem %s170_s26, 256  ;;  %p305_p11 = scmp.lt.s32.totalorder %s170_s26, %s170_s26 }
  0x3b   :  { %215 = vmatprep.mubr.msk.f32.mxu0 %vm70_vm0, %v57_v5  ;;  %219 = vmatprep.subr.bf16.mxu0 %v218_v3  ;;  %p301_p10 = scmp.ne.s32.totalorder %s170_s26, %s300_s30  ;;  %p306_p12 = scmp.lt.s32.totalorder %s300_s30, %s300_s30 }
  0x3c   :  { %221 = vmatpush3.bf16.msra.mxu0 %v218_v3 }
  0x3d   :  { %223 = vmatprep.subr.bf16.mxu0 %v222_v6  ;;  %p307_p13 = por %p306_p12, %p305_p11 }
  0x3f   :  { %p308_p0 = pnand %p307_p13, %p301_p10 }
  0x40   :  { %225 = vmatpush3.bf16.msra.mxu0 %v222_v6 }
  0x43   :  { %216 = vmatmul.mubr.msk.f32.vlgmr.msra.gmra.mrb[0].mxu0 %vm70_vm0, %v58_v7 }
 0x116   :  { %v217_v9 = vpop.f32.mrb[0].mxu0 }
 0x117   :  { %v149_v10 = vadd.f32 %v217_v9, %v198_v8  ;;  %v143_v11 = vpop.f32.mrb[1].mxu0 }
 0x118   :  { %v144_v12 = vadd.f32 %v198_v8, %v143_v11 }
 0x119   :  { %153 = vst.msk [vmem:[#allocation8 + $0x8] sm:$0xff] %vm70_vm0, %v149_v10 }
 0x11a   :  { %152 = vst.msk [vmem:[#allocation8] sm:$0xff] %vm70_vm0, %v144_v12  ;;  %156 = vrot.lane.b32.xlu0 %v144_v12, %s358_s29 }
 0x11b   :  { %311 = shalt.err (!%p308_p0)
}
 0x11c   :  { %s312_s7 = scalar_lea.hbm %s473_s3, 256 }
 0x11d   :  { %p313_p1 = scmp.ne.s32.totalorder %s473_s3, %s312_s7  ;;  %p316_p2 = scmp.lt.u32.totalorder %s312_s7, %s473_s3 }
 0x11f   :  { %p318_p3 = pnand %p316_p2, %p313_p1 }
 0x121   :  { %321 = shalt.err (!%p318_p3)
}
 0x122   :  { %175 = dma.vmem_to_hbm [thread:$0]  %s170_s26, 256, %s473_s3, [#allocation4], %s354_s27, %s354_s27, %s355_s28  }
 0x123   :  { %158 = vrot.lane.b32.xlu0 %v149_v10, %s358_s29  ;;  %s359_s13 = smov [#allocation9]  }
 0x124   :  { %s181_s14 = sshll.u32 %s359_s13, 4  ;;  %s182_s14 = int_to_ptr.vmem [resolvable:$true] %s181_s14 }
 0x125   :  { %s322_s15 = scalar_lea.vmem %s182_s14, 256  ;;  %p327_p5 = scmp.lt.s32.totalorder %s182_s14, %s182_s14 }
 0x126   :  { %p323_p4 = scmp.ne.s32.totalorder %s182_s14, %s322_s15  ;;  %p328_p6 = scmp.lt.s32.totalorder %s322_s15, %s322_s15 }
 0x128   :  { %p329_p7 = por %p328_p6, %p327_p5 }
 0x12a   :  { %p330_p8 = pnand %p329_p7, %p323_p4 }
 0x18c   :  { %v157_v13 = vpop.permute.xlu0 %156 }
 0x18d   :  { %162 = vst.msk [vmem:[#allocation9] sm:$0xff] %vm70_vm0, %v157_v13 }
 0x195   :  { %v159_v14 = vpop.permute.xlu0 %158 }
 0x196   :  { %163 = vst.msk [vmem:[#allocation9 + $0x8] sm:$0xff] %vm70_vm0, %v159_v14 }
 0x197   :  { %333 = shalt.err (!%p330_p8)
}
 0x198   :  { %s334_s3 = scalar_lea.hbm %s474_s4, 256 }
 0x199   :  { %p335_p9 = scmp.ne.s32.totalorder %s474_s4, %s334_s3  ;;  %p338_p10 = scmp.lt.u32.totalorder %s334_s3, %s474_s4 }
 0x19b   :  { %p340_p11 = pnand %p338_p10, %p335_p9 }
 0x19d   :  { %343 = shalt.err (!%p340_p11)
}
 0x19e   :  { %187 = dma.vmem_to_hbm [thread:$0]  %s182_s14, 256, %s474_s4, [#allocation10], %s354_s27, %s354_s27, %s355_s28  }
 0x19f   :  { %348 = dma.done.wait [#allocation4], 256  }
 0x1a0   :  { %349 = vsyncadd [#allocation4], 4294967040 }
 0x1a1   :  { %350 = dma.done.wait [#allocation10], 256  }
 0x1a2   :  { %351 = vsyncadd [#allocation10], 4294967040 }
 0x1a3   :  { %194 = vsyncpa [#allocation3], 1 }
 0x1a4   :  { %195 = vsyncpa [#allocation6], 1 }
 0x1a5   :  { %196 = vsyncpa [#allocation4], 1 }
 0x1a6   :  { %197 = vsyncpa [#allocation10], 1 }

</bundles_post_ra>
